<compile_context>
chip_gen: v6e
topology: v6e:2x2x1
jax: 0.10.0
libtpu: 0.0.40
codegen_flags: <defaults>
</compile_context>

<pallas_src>
import jax
import jax.numpy as jnp
from jax.experimental import pallas as pl
from jax.experimental.pallas import tpu as pltpu


# ------------------------------ fused kernels ------------------------------ #

def _fused_concat_kernel(xs_ref, w_ref, b_ref, res_ref, o_ref):
    """c_in <= c_out path:  out = relu(xs @ W_comb + b) + residual(cat[x, zeros])."""
    acc = jnp.dot(xs_ref[0], w_ref[...], preferred_element_type=jnp.float32)
    acc = acc + b_ref[...]                               # (T, c_out*n) + (1, c_out*n)
    o_ref[0] = (jnp.maximum(acc, 0.0) + res_ref[0]).astype(o_ref.dtype)


def _fused_conv_kernel(xs_ref, w_ref, b_ref, xt_ref, cw_ref, o_ref):
    """c_in > c_out path:   out = relu(xs @ W_comb + b) + (x_t @ C_res)  [fused 1x1 conv]."""
    acc = jnp.dot(xs_ref[0], w_ref[...], preferred_element_type=jnp.float32)
    acc = acc + b_ref[...]
    res = jnp.dot(xt_ref[0], cw_ref[...], preferred_element_type=jnp.float32)
    o_ref[0] = (jnp.maximum(acc, 0.0) + res).astype(o_ref.dtype)


def _make_forward(B, T, c_in, c_out, n, conv_case):
    """Build the single fused pallas_call for fixed shapes."""
    cn, on = c_in * n, c_out * n
    if conv_case:
        kernel = _fused_conv_kernel
        in_specs = [
            pl.BlockSpec((1, T, cn), lambda b: (b, 0, 0)),   # xs  (scrambled view, bf16)
            pl.BlockSpec((cn, on), lambda b: (0, 0)),        # W_comb (bf16)
            pl.BlockSpec((1, on), lambda b: (0, 0)),         # lane-expanded Linear bias
            pl.BlockSpec((1, T, cn), lambda b: (b, 0, 0)),   # x_t (time-major view, bf16)
            pl.BlockSpec((cn, on), lambda b: (0, 0)),        # C_res (bf16)
        ]
    else:
        kernel = _fused_concat_kernel
        in_specs = [
            pl.BlockSpec((1, T, cn), lambda b: (b, 0, 0)),   # xs  (scrambled view, bf16)
            pl.BlockSpec((cn, on), lambda b: (0, 0)),        # W_comb (bf16)
            pl.BlockSpec((1, on), lambda b: (0, 0)),         # lane-expanded Linear bias
            pl.BlockSpec((1, T, on), lambda b: (b, 0, 0)),   # residual, f32, output layout
        ]
    return pl.pallas_call(
        kernel,
        out_shape=jax.ShapeDtypeStruct((B, T, on), jnp.float32),
        grid_spec=pltpu.PrefetchScalarGridSpec(
            num_scalar_prefetch=0,
            grid=(B,),                                        # 2 parallel steps at B=2
            in_specs=in_specs,
            out_specs=pl.BlockSpec((1, T, on), lambda b: (b, 0, 0)),
        ),
        compiler_params=pltpu.CompilerParams(
            dimension_semantics=("parallel",),
        ),
    )


# ------------------------------ SpatioCov ----------------------------------- #

class SpatioCovPallas:
    """JAX/Pallas re-implementation of the PyTorch SpatioCov module."""

    def __init__(self, x_shape, Ks, c_out, key):
        self.Ks = Ks
        self.c_out = c_out
        self.batch_size, self.c_in, self.T_slot, self.n_node = x_shape
        B, c_in, T, n = x_shape

        k1, k2, k3, k4 = jax.random.split(key, 4)
        # Global graph kernel gp.Kernel, shape (n, Ks*n), synthesized in-script.
        self.graph_kernel = (
            jax.random.normal(k1, (n, Ks * n), jnp.float32)
            / jnp.sqrt(jnp.float32(n)))
        # nn.Linear(Ks*c_in, c_out): weight stored transposed as (c_in*Ks, c_out).
        # Row ordering is (c_in major, Ks minor) -- the feature order the torch permute
        # chain actually produces; a real checkpoint W (c_out, Ks*c_in) maps to W.T with
        # the same row order (documented per the correctness review).
        self.lin_w = (
            jax.random.normal(k2, (c_in * Ks, c_out), jnp.float32)
            / jnp.sqrt(jnp.float32(c_in * Ks)))
        self.lin_b = jax.random.normal(k3, (1, c_out), jnp.float32) * 0.1

        if c_in > c_out:
            # nn.Conv2d(c_in, c_out, (1,1), bias=False); weight stored as (c_in, c_out).
            self.conv_w = (
                jax.random.normal(k4, (c_in, c_out), jnp.float32)
                / jnp.sqrt(jnp.float32(c_in)))
            self.bias_param = None
        else:
            self.conv_w = None
            # nn.Parameter(torch.zeros(B, c_out - c_in, T, n))
            self.bias_param = jnp.zeros((B, c_out - c_in, T, n), jnp.float32)

        # ---- derived, kernel-ready parameters (computed once at init) ----
        # W_comb[c*n + m, o*n + v] = sum_k lin_w[c*Ks + k, o] * graph_kernel[m, k*n + v]
        lw3 = self.lin_w.reshape(c_in, Ks, c_out)           # [c, k, o]
        gk3 = self.graph_kernel.reshape(n, Ks, n)           # [m, k, v]
        w_comb = jnp.einsum("cko,mkv->cmov", lw3, gk3,
                            precision=jax.lax.Precision.HIGHEST)
        # TODO(synk): for large n_node, tile the c_out*n axis of W_comb (or keep the
        # two-GEMM factorization) instead of one full-width block, to respect v7x VMEM.
        self.w_comb = w_comb.reshape(c_in * n, c_out * n).astype(jnp.bfloat16)
        # Linear bias expanded to the (o, v) lane layout: lin_b_cf[o*n + v] = lin_b[o].
        self.lin_b_cf = jnp.repeat(self.lin_b[0], n).reshape(1, c_out * n)
        if self.conv_w is not None:
            # C_res[c*n + m, o*n + v] = conv_w[c, o] * delta[m, v]  (fused 1x1 conv bias).
            c_res = jnp.einsum("co,mv->cmov", self.conv_w,
                               jnp.eye(n, dtype=jnp.float32))
            self.c_res = c_res.reshape(c_in * n, c_out * n).astype(jnp.bfloat16)
        else:
            self.c_res = None

        self._fwd = _make_forward(B, T, c_in, c_out, n,
                                  conv_case=self.conv_w is not None)

    def __call__(self, x):
        B, c_in, T, n = x.shape
        c_out = self.c_out
        # Free row-major reinterpretation of NCHW x: reproduces torch.reshape(x, (-1, n))
        # followed by the (-1, c_in, Ks, n) re-grouping exactly (no data movement).
        xs = x.reshape(B, T, c_in * n).astype(jnp.bfloat16)
        if self.conv_w is not None:
            # Time-major view of x feeding the fused 1x1-conv residual GEMM.
            x_t = (jnp.transpose(x, (0, 2, 1, 3))
                   .reshape(B, T, c_in * n).astype(jnp.bfloat16))
            out_flat = self._fwd(xs, self.w_comb, self.lin_b_cf, x_t, self.c_res)
        else:
            # bias = cat([x, zeros-param], dim=1), presented in the kernel's lane-dense
            # (B, T, c_out*n) output layout. This identity residual cannot be produced
            # from the scrambled xs view, so the tiny (8 KiB) relayout is left to XLA.
            res = (jnp.concatenate([x, self.bias_param], axis=1)
                   .transpose(0, 2, 1, 3)
                   .reshape(B, T, c_out * n))
            out_flat = self._fwd(xs, self.w_comb, self.lin_b_cf, res)
        # Restore the PyTorch NCHW output layout (cheap wrapper-side transpose).
        return jnp.transpose(out_flat.reshape(B, T, c_out, n), (0, 2, 1, 3))

    # Pure-JAX reference mirroring the torch forward step by step (f32, HIGHEST).
    def reference(self, x):
        B, c_in, T, n = x.shape
        Ks, c_out = self.Ks, self.c_out
        if self.conv_w is not None:
            bias = jnp.einsum("bctn,co->botn", x, self.conv_w)
        else:
            bias = jnp.concatenate([x, self.bias_param], axis=1)
        hp = jax.lax.Precision.HIGHEST
        xf = x.reshape(-1, n)
        gc = jnp.dot(xf, self.graph_kernel, precision=hp)
        gc = gc.reshape(-1, c_in, Ks, n)
        gc = jnp.transpose(gc, (0, 3, 1, 2)).reshape(-1, c_in * Ks)
        y = jnp.dot(gc, self.lin_w, precision=hp) + self.lin_b
        y = y.reshape(B, T, n, c_out)
        y = jnp.transpose(y, (0, 3, 1, 2))
        return jnp.maximum(y, 0.0) + bias


# --------------------------------- main -------------------------------------- #

if __name__ == "__main__":
    key = jax.random.PRNGKey(0)
    k_x1, k_p1, k_x2, k_p2 = jax.random.split(key, 4)

    # Tolerance note: GEMM operands are bf16 (MXU-native, per perf review) with f32
    # accumulation, so ~1e-2 worst-case abs error vs. the all-f32 reference is expected;
    # layout/indexing bugs would produce O(1) errors and still be caught.
    RTOL = ATOL = 2e-2

    # ---- Config 1 (primary): c_in <= c_out -> concat/zeros bias branch ----
    B, c_in, T, n = 2, 4, 8, 16
    Ks, c_out = 3, 8
    x1 = jax.random.normal(k_x1, (B, c_in, T, n), jnp.float32)
    mod1 = SpatioCovPallas([B, c_in, T, n], Ks, c_out, k_p1)
    out1 = jax.block_until_ready(jax.jit(mod1.__call__)(x1))
    ref1 = jax.block_until_ready(mod1.reference(x1))
    assert out1.shape == (B, c_out, T, n), out1.shape
    assert jnp.allclose(out1, ref1, rtol=RTOL, atol=ATOL), (
        float(jnp.max(jnp.abs(out1 - ref1))))

    # ---- Config 2: c_in > c_out -> fused 1x1-conv bias branch ----
    B2, c_in2, T2, n2 = 2, 8, 8, 16
    Ks2, c_out2 = 3, 4
    x2 = jax.random.normal(k_x2, (B2, c_in2, T2, n2), jnp.float32)
    mod2 = SpatioCovPallas([B2, c_in2, T2, n2], Ks2, c_out2, k_p2)
    out2 = jax.block_until_ready(jax.jit(mod2.__call__)(x2))
    ref2 = jax.block_until_ready(mod2.reference(x2))
    assert out2.shape == (B2, c_out2, T2, n2), out2.shape
    assert jnp.allclose(out2, ref2, rtol=RTOL, atol=ATOL), (
        float(jnp.max(jnp.abs(out2 - ref2))))

    print("KERNEL_OK")
</pallas_src>

<mosaic_0001>
module attributes {stable_mosaic.version = 11 : i64} {
  func.func @_fused_concat_kernel(%arg0: i32, %arg1: memref<1x8x64xbf16, #tpu.memory_space<vmem>>, %arg2: memref<64x128xbf16, #tpu.memory_space<vmem>>, %arg3: memref<1x128xf32, #tpu.memory_space<vmem>>, %arg4: memref<1x8x128xf32, #tpu.memory_space<vmem>>, %arg5: memref<1x8x128xf32, #tpu.memory_space<vmem>>) attributes {dimension_semantics = [#tpu.dimension_semantics<parallel>], iteration_bounds = array<i64: 2>, scalar_prefetch = 0 : i64, scratch_operands = 0 : i64, tpu.core_type = #tpu.core_type<tc>, window_params = [{transform_indices = @transform_0, window_bounds = array<i64: 1, 8, 64>}, {pipeline_mode = #tpu.pipeline_mode<synchronous>, transform_indices = @transform_1, window_bounds = array<i64: 64, 128>}, {pipeline_mode = #tpu.pipeline_mode<synchronous>, transform_indices = @transform_2, window_bounds = array<i64: 1, 128>}, {transform_indices = @transform_3, window_bounds = array<i64: 1, 8, 128>}, {transform_indices = @transform_4, window_bounds = array<i64: 1, 8, 128>}]} {
    %c0 = arith.constant 0 : index
    %c0_0 = arith.constant 0 : index
    %c0_1 = arith.constant 0 : index
    %0 = vector.load %arg1[%c0, %c0_0, %c0_1] : memref<1x8x64xbf16, #tpu.memory_space<vmem>>, vector<1x8x64xbf16>
    %1 = vector.shape_cast %0 : vector<1x8x64xbf16> to vector<8x64xbf16>
    %c0_2 = arith.constant 0 : index
    %c0_3 = arith.constant 0 : index
    %2 = vector.load %arg2[%c0_2, %c0_3] : memref<64x128xbf16, #tpu.memory_space<vmem>>, vector<64x128xbf16>
    %cst = arith.constant dense<0.000000e+00> : vector<8x128xf32>
    %3 = tpu.matmul %1, %2, %cst {dimension_numbers = #tpu.dot_dimension_numbers<[1], [0], [0], [1], [0, 0, 1, 1], [], []>} : vector<8x64xbf16>, vector<64x128xbf16>, vector<8x128xf32> -> vector<8x128xf32>
    %c0_4 = arith.constant 0 : index
    %c0_5 = arith.constant 0 : index
    %4 = vector.load %arg3[%c0_4, %c0_5] : memref<1x128xf32, #tpu.memory_space<vmem>>, vector<1x128xf32>
    %5 = vector.broadcast %4 : vector<1x128xf32> to vector<8x128xf32>
    %6 = arith.addf %3, %5 : vector<8x128xf32>
    %cst_6 = arith.constant 0.000000e+00 : f32
    %7 = vector.broadcast %cst_6 : f32 to vector<8x128xf32>
    %8 = arith.maximumf %6, %7 : vector<8x128xf32>
    %c0_7 = arith.constant 0 : index
    %c0_8 = arith.constant 0 : index
    %c0_9 = arith.constant 0 : index
    %9 = vector.load %arg4[%c0_7, %c0_8, %c0_9] : memref<1x8x128xf32, #tpu.memory_space<vmem>>, vector<1x8x128xf32>
    %10 = vector.shape_cast %9 : vector<1x8x128xf32> to vector<8x128xf32>
    %11 = arith.addf %8, %10 : vector<8x128xf32>
    %c0_10 = arith.constant 0 : index
    %c0_11 = arith.constant 0 : index
    %c0_12 = arith.constant 0 : index
    %12 = vector.load %arg5[%c0_10, %c0_11, %c0_12] : memref<1x8x128xf32, #tpu.memory_space<vmem>>, vector<1x8x128xf32>
    %13 = vector.shape_cast %12 : vector<1x8x128xf32> to vector<8x128xf32>
    %14 = vector.shape_cast %11 : vector<8x128xf32> to vector<1x8x128xf32>
    tpu.vector_store %arg5[%c0_10, %c0_11, %c0_12], %14 {strides = array<i32>} : memref<1x8x128xf32, #tpu.memory_space<vmem>>, vector<1x8x128xf32>,
    return
  }
  func.func @transform_0(%arg0: i32) -> (i32, i32, i32) {
    %c0_i32 = arith.constant 0 : i32
    %c0_i32_0 = arith.constant 0 : i32
    %c0_i32_1 = arith.constant 0 : i32
    return %arg0, %c0_i32, %c0_i32_0 : i32, i32, i32
  }
  func.func @transform_1(%arg0: i32) -> (i32, i32) {
    %c0_i32 = arith.constant 0 : i32
    %c0_i32_0 = arith.constant 0 : i32
    %c0_i32_1 = arith.constant 0 : i32
    return %c0_i32, %c0_i32_0 : i32, i32
  }
  func.func @transform_2(%arg0: i32) -> (i32, i32) {
    %c0_i32 = arith.constant 0 : i32
    %c0_i32_0 = arith.constant 0 : i32
    %c0_i32_1 = arith.constant 0 : i32
    return %c0_i32, %c0_i32_0 : i32, i32
  }
  func.func @transform_3(%arg0: i32) -> (i32, i32, i32) {
    %c0_i32 = arith.constant 0 : i32
    %c0_i32_0 = arith.constant 0 : i32
    %c0_i32_1 = arith.constant 0 : i32
    return %arg0, %c0_i32, %c0_i32_0 : i32, i32, i32
  }
  func.func @transform_4(%arg0: i32) -> (i32, i32, i32) {
    %c0_i32 = arith.constant 0 : i32
    %c0_i32_0 = arith.constant 0 : i32
    %c0_i32_1 = arith.constant 0 : i32
    return %arg0, %c0_i32, %c0_i32_0 : i32, i32, i32
  }
}

</mosaic_0001>

<bundles_post_ra>
// kernel: a_call__.1
= control target key start
LH: loop header
LB: loop body
LE: loop exit
PB: predicated region body
PF: predicated region fallthrough
CT: control target
= control target key end

     0   :  { %s446_s15 = smov 0   ;;  %s481_s0 = inlined_call_operand.vmem [shape: bf16[2,8,64], index: 0, kind: input, shape index: {}]   ;;  %s482_s1 = inlined_call_operand.vmem [shape: bf16[64,128], index: 1, kind: input, shape index: {}]   ;;  %s483_s2 = inlined_call_operand.vmem [shape: f32[1,128], index: 2, kind: input, shape index: {}]   ;;  %s484_s3 = inlined_call_operand.vmem [shape: f32[2,8,128], index: 3, kind: input, shape index: {}]   ;;  %s485_s4 = inlined_call_operand.vmem [shape: f32[2,8,128], index: 4, kind: output, shape index: {}]  }
   0x1 LB: > { %s364_s16 = sadd.s32 4294967295, %s417_s15   ;;  %p368_p0 = scmp.ge.s32.totalorder %s417_s15, 1  ;;  %s417_s15 = sphi %s446_s15, %s14_s15  }
   0x2   : > { %p170_p1 = scmp.lt.s32.totalorder %s417_s15, 3 }
   0x4   : > { %p171_p2 = pnand %p368_p0, %p170_p1 }
   0x5   : > { %p198_p3 = scmp.lt.s32.totalorder (!%p171_p2), %s364_s16, 1 }
   0x6   : > { %174 = sbr.rel (%p171_p2) target bundleno = 228 (0xe4), region = 36 }
   0xb   : > { %v407_v0 = vld [vmem:[%s482_s1 + $0x18] sm:$0xff]   ;;  %v419_v1 = vmov 0.0   ;;  %v408_v2 = vld [vmem:[%s482_s1 + $0x10] sm:$0xff]   ;;  %vm420_vm0 = vmmov 0   ;;  %s487_s16 = smov (!%p198_p3, %s364_s16), 1  ;;  %v409_v3 = vld [vmem:[%s482_s1 + $0x8] sm:$0xff]  }
   0xc   : > { %385 = vmatprep.subr.bf16.mxu0 %v419_v1  ;;  %393 = vmatprep.mubr.msk.bf16.mxu0 %vm420_vm0, %v419_v1  ;;  %s369_s23 = sshll.u32 %s487_s16, 2  ;;  %v410_v4 = vld [vmem:[%s482_s1] sm:$0xff]   ;;  %vm251_vm1 = vcmask 523264   ;;  %s370_s29 = sshll.u32 %s487_s16, 3 }
   0xd   : > { %386 = vmatpush3.bf16.msra.mxu0 %v407_v0  ;;  %s201_s28 = scalar_lea.vmem %s481_s0, %s369_s23  ;;  %v372_v6 = vld [vmem:[%s483_s2] ss:$0 sm:$0xff]  ;;  %s205_s8 = scalar_lea.vmem %s484_s3, %s370_s29 }
   0xe   : > { %387 = vmatprep.subr.bf16.mxu0 %v419_v1  ;;  %v211_v5 = vld [vmem:[%s201_s28] sm:$0xf]  ;;  %s209_s11 = scalar_lea.vmem %s485_s4, %s370_s29 }
   0xf   : > { %v296_v9 = vld [vmem:[%s205_s8] sm:$0xff] }
  0x11   : > { %388 = vmatpush3.bf16.msra.mxu0 %v408_v2 }
  0x12   : > { %389 = vmatprep.subr.bf16.mxu0 %v419_v1 }
  0x15   : > { %390 = vmatpush3.bf16.msra.mxu0 %v409_v3 }
  0x16   : > { %391 = vmatprep.subr.bf16.mxu0 %v419_v1 }
  0x19   : > { %392 = vmatpush3.bf16.msra.mxu0 %v410_v4 }
  0x1c   : > { %394 = vmatmul.mubr.msk.bf16.vlgmr.msra.gmra.mxu0 %vm251_vm1, %v211_v5 }
  0xdc   : > { %v289_v7 = vpop.f32.mrf.mxu0 }
  0xdd   : > { %v290_v8 = vadd.f32 %v372_v6, %v289_v7 }
  0xde   : > { %v395_v10 = vpop.f32.mrf.mxu0 }
  0xdf   : > { %v295_v11 = vmax.f32 %v290_v8, 0.0 }
  0xe0   : > { %v292_v12 = vpop.f32.mrf.mxu0 }
  0xe1   : > { %v297_v13 = vadd.f32 %v296_v9, %v295_v11 }
  0xe2   : > { %v396_v14 = vpop.f32.mrf.mxu0 }
  0xe3   : > { %298 = vst [vmem:[%s209_s11] sm:$0xff] %v297_v13 }
  0xe4 PF: > { %s14_s15 = sadd.s32 1, %s417_s15  }
  0xe5   : > { %p11_p4 = scmp.ge.s32.totalorder %s14_s15, 4  }
  0xe7   :  { %13 = sbr.rel (!%p11_p4) target bundleno = 1 (0x1), region = 69 }

</bundles_post_ra>
